<compile_context>
chip_gen: v5e
topology: v5e:2x2
jax: 0.10.0
libtpu: 0.0.40
codegen_flags: <defaults>
</compile_context>

<pallas_src>
import functools
import math

import jax
import jax.numpy as jnp
from jax.experimental import pallas as pl
from jax.experimental.pallas import tpu as pltpu

MATMUL_DTYPE = jnp.float32  # bf16 is the production option (relaxed tolerance)


def _round_up(x, m):
    return (x + m - 1) // m * m


def _vmem_capacity_bytes():
    try:
        return int(getattr(pltpu.get_tpu_info(), "vmem_capacity_bytes", 128 << 20))
    except Exception:
        return 128 << 20


def _double_conv_kernel(x_ref, m_ref,
                        w1_ref, g1_ref, be1_ref,
                        w2_ref, g2_ref, be2_ref,
                        out_ref,
                        cat1_ref, hext_ref, cat2_ref,
                        *, N, L, W, act, eps):
    """All refs resident in VMEM (single invocation, no grid).

    x_ref   : (Cin_p,  W+256)   padded input slab; data at columns [128, 128+N*Lp)
    m_ref   : (1, W)            1.0 at valid columns (per-sample padded positions 1..L)
    w1_ref  : (Cmid_p, 3*Cin_p) conv1 weight, tap-major along K
    w2_ref  : (Cout_p, 3*Cmid_p)
    g/be    : (C, 1)            BN gamma / beta
    out_ref : (Cout_p, W)
    cat1_ref: (3*Cin_p, W)      K-concat of the 3 shifted conv1 operands
    hext_ref: (Cmid_p, W+256)   activated intermediate with 128-lane zero borders
    cat2_ref: (3*Cmid_p, W)     K-concat of the 3 shifted conv2 operands
    """
    Cin_p = cat1_ref.shape[0] // 3
    Cmid_p = hext_ref.shape[0]
    inv_cnt = 1.0 / float(N * L)   # BN statistics count = valid positions only
    mask = m_ref[...]

    def act_fn(z):
        return jnp.maximum(z, 0.0) if act == "relu" else jnp.tanh(z)

    # ---- conv1: K-concat of 3 shifted input windows -> ONE matmul (K = 3*Cin_p).
    # (Conv bias omitted: it cancels exactly through the training-mode BN mean.)
    cat1_ref[0 * Cin_p:1 * Cin_p, :] = x_ref[:, 127:127 + W]
    cat1_ref[1 * Cin_p:2 * Cin_p, :] = x_ref[:, 128:128 + W]
    cat1_ref[2 * Cin_p:3 * Cin_p, :] = x_ref[:, 129:129 + W]
    h_raw = jnp.dot(w1_ref[...], cat1_ref[...], preferred_element_type=jnp.float32)

    # ---- BN1 (training-mode batch stats, single masked pass) + act, one FMA ----
    hm = h_raw * mask
    s1 = jnp.sum(hm, axis=1, keepdims=True)
    q1 = jnp.sum(hm * hm, axis=1, keepdims=True)
    mean1 = s1 * inv_cnt
    var1 = q1 * inv_cnt - mean1 * mean1            # biased var (torch train mode)
    scale1 = g1_ref[...] * jax.lax.rsqrt(var1 + eps)
    shift1 = be1_ref[...] - mean1 * scale1
    h_act = act_fn(h_raw * scale1 + shift1) * mask   # pad/tail columns exactly 0

    # ---- stage intermediate once, with 128-lane zero borders for the +/-1 windows
    hext_ref[:, 0:128] = jnp.zeros((Cmid_p, 128), jnp.float32)
    hext_ref[:, 128:128 + W] = h_act
    hext_ref[:, 128 + W:] = jnp.zeros((Cmid_p, 128), jnp.float32)

    # ---- conv2: same K-concat trick -> ONE matmul (K = 3*Cmid_p) ----
    cat2_ref[0 * Cmid_p:1 * Cmid_p, :] = hext_ref[:, 127:127 + W]
    cat2_ref[1 * Cmid_p:2 * Cmid_p, :] = h_act
    cat2_ref[2 * Cmid_p:3 * Cmid_p, :] = hext_ref[:, 129:129 + W]
    o = jnp.dot(w2_ref[...], cat2_ref[...], preferred_element_type=jnp.float32)

    # ---- BN2 + act ----
    om = o * mask
    s2 = jnp.sum(om, axis=1, keepdims=True)
    q2 = jnp.sum(om * om, axis=1, keepdims=True)
    mean2 = s2 * inv_cnt
    var2 = q2 * inv_cnt - mean2 * mean2
    scale2 = g2_ref[...] * jax.lax.rsqrt(var2 + eps)
    shift2 = be2_ref[...] - mean2 * scale2
    out_ref[...] = act_fn(o * scale2 + shift2)   # invalid columns sliced off by wrapper


def double_conv(x, params, act="relu", eps=1e-5):
    """x: (N, Cin, L) float32, NCL (PyTorch Conv1d convention)."""
    # b1/b2 are accepted (module has them) but not passed to the kernel: a conv
    # bias immediately before training-mode BatchNorm cancels through the mean.
    w1, b1, g1, be1, w2, b2, g2, be2 = params
    del b1, b2
    N, Cin, L = x.shape
    Cmid = w1.shape[0]
    Cout = w2.shape[0]
    Lp = L + 2
    NLp = N * Lp

    Cin_p = _round_up(Cin, 8)
    Cmid_p = _round_up(Cmid, 8)
    Cout_p = _round_up(Cout, 8)
    W = _round_up(NLp, 128)
    Wx = W + 256
    f32 = jnp.float32
    mm_dt = MATMUL_DTYPE

    # ---- glue (plain JAX): channels-major layout, per-sample pad, channel pad ----
    xc = jnp.transpose(x.astype(f32), (1, 0, 2))                 # (Cin, N, L)
    xp = jnp.pad(xc, ((0, Cin_p - Cin), (0, 0), (1, 1)))         # (Cin_p, N, Lp)
    x_slab = xp.reshape(Cin_p, NLp)
    x_ext = jnp.pad(x_slab, ((0, 0), (128, Wx - 128 - NLp))).astype(mm_dt)

    # weights, tap-major along K: w[m, k*C + c] = w[m, c, k]
    w1p = jnp.pad(w1.astype(f32), ((0, Cmid_p - Cmid), (0, Cin_p - Cin), (0, 0)))
    w1f = jnp.transpose(w1p, (0, 2, 1)).reshape(Cmid_p, 3 * Cin_p).astype(mm_dt)
    w2p = jnp.pad(w2.astype(f32), ((0, Cout_p - Cout), (0, Cmid_p - Cmid), (0, 0)))
    w2f = jnp.transpose(w2p, (0, 2, 1)).reshape(Cout_p, 3 * Cmid_p).astype(mm_dt)

    def pad1(v, Cp, fill=0.0):
        v = v.astype(f32)
        return jnp.pad(v, (0, Cp - v.shape[0]), constant_values=fill).reshape(-1, 1)

    j = jnp.arange(W)
    jm = j % Lp
    mask = ((j < NLp) & (jm >= 1) & (jm <= L)).astype(f32).reshape(1, W)

    # ---- cost / generation-aware VMEM sizing (nothing is double-buffered) ----
    flops = 2 * N * L * 3 * (Cin * Cmid + Cmid * Cout)
    transc = (N * L * (Cmid + Cout)) if act == "tanh" else 0
    bytes_acc = 4 * (x_ext.size + mask.size + w1f.size + w2f.size
                     + 2 * (Cmid_p + Cout_p) + Cout_p * W)
    resident = 4 * (x_ext.size + mask.size + w1f.size + w2f.size
                    + 2 * (Cmid_p + Cout_p) + Cout_p * W
                    + 3 * Cin_p * W + Cmid_p * (W + 256) + 3 * Cmid_p * W)
    cap = _vmem_capacity_bytes()                      # 64 MiB v7x, 128 MiB v5e/v6e
    vmem_limit = int(min(max(int(resident * 1.25) + (8 << 20), 32 << 20),
                         int(cap * 0.85)))            # leave Mosaic headroom

    vmem = pl.BlockSpec(memory_space=pltpu.MemorySpace.VMEM)
    kern = functools.partial(_double_conv_kernel, N=N, L=L, W=W, act=act, eps=eps)

    out = pl.pallas_call(
        kern,
        out_shape=jax.ShapeDtypeStruct((Cout_p, W), jnp.float32),
        in_specs=[vmem] * 8,
        out_specs=vmem,
        scratch_shapes=[pltpu.VMEM((3 * Cin_p, W), mm_dt),
                        pltpu.VMEM((Cmid_p, W + 256), jnp.float32),
                        pltpu.VMEM((3 * Cmid_p, W), jnp.float32)],
        compiler_params=pltpu.CompilerParams(vmem_limit_bytes=vmem_limit),
        cost_estimate=pl.CostEstimate(flops=int(flops), transcendentals=int(transc),
                                      bytes_accessed=int(bytes_acc)),
    )(x_ext, mask,
      w1f, pad1(g1, Cmid_p, 1.0), pad1(be1, Cmid_p),
      w2f, pad1(g2, Cout_p, 1.0), pad1(be2, Cout_p))

    # valid outputs for sample n live at columns n*Lp + i, i in [1, L]
    out = out[:Cout, :NLp].reshape(Cout, N, Lp)[:, :, 1:1 + L]
    return jnp.transpose(out, (1, 0, 2))                          # back to NCL


def _ref_double_conv(x, params, act, eps):
    """Pure-JAX reference mirroring the PyTorch module (training-mode BN)."""
    w1, b1, g1, be1, w2, b2, g2, be2 = params

    def conv(z, w, b):
        y = jax.lax.conv_general_dilated(
            z, w, window_strides=(1,), padding=((1, 1),),
            dimension_numbers=("NCH", "OIH", "NCH"))
        return y + b[None, :, None]

    def bn(z, g, be):
        m = jnp.mean(z, axis=(0, 2), keepdims=True)
        v = jnp.mean((z - m) ** 2, axis=(0, 2), keepdims=True)
        return (z - m) * jax.lax.rsqrt(v + eps) * g[None, :, None] + be[None, :, None]

    a = (lambda z: jnp.maximum(z, 0.0)) if act == "relu" else jnp.tanh
    h = a(bn(conv(x, w1, b1), g1, be1))
    return a(bn(conv(h, w2, b2), g2, be2))


def _make_params(key, Cin, Cmid, Cout):
    ks = jax.random.split(key, 4)
    bd1 = 1.0 / math.sqrt(Cin * 3)
    w1 = jax.random.uniform(ks[0], (Cmid, Cin, 3), jnp.float32, -bd1, bd1)
    b1 = jax.random.uniform(ks[1], (Cmid,), jnp.float32, -bd1, bd1)
    g1 = jnp.ones((Cmid,), jnp.float32)
    be1 = jnp.zeros((Cmid,), jnp.float32)
    bd2 = 1.0 / math.sqrt(Cmid * 3)
    w2 = jax.random.uniform(ks[2], (Cout, Cmid, 3), jnp.float32, -bd2, bd2)
    b2 = jax.random.uniform(ks[3], (Cout,), jnp.float32, -bd2, bd2)
    g2 = jnp.ones((Cout,), jnp.float32)
    be2 = jnp.zeros((Cout,), jnp.float32)
    return (w1, b1, g1, be1, w2, b2, g2, be2)


if __name__ == "__main__":
    key = jax.random.PRNGKey(0)
    configs = [
        # (N, Cin, Cout, L, act)  -- mid_channels defaults to out_channels
        (2, 4, 8, 16, "relu"),
        (2, 3, 6, 16, "tanh"),    # channel-padding paths
        (3, 5, 10, 50, "relu"),   # multi-128-lane width (W=256), Cmid_p/Cout_p=16
    ]
    for idx, (N, Cin, Cout, L, act) in enumerate(configs):
        kx, kp = jax.random.split(jax.random.fold_in(key, idx))
        x = jax.random.normal(kx, (N, Cin, L), jnp.float32)
        params = _make_params(kp, Cin, Cout, Cout)

        y = double_conv(x, params, act=act)
        jax.block_until_ready(y)

        y_ref = _ref_double_conv(x, params, act, 1e-5)
        assert y.shape == (N, Cout, L), y.shape
        err = float(jnp.max(jnp.abs(y - y_ref)))
        assert jnp.allclose(y, y_ref, atol=1e-4, rtol=1e-4), (act, err)

    print("KERNEL_OK")
</pallas_src>

<mosaic_0001>
module attributes {stable_mosaic.version = 11 : i64} {
  func.func @_double_conv_kernel(%arg0: memref<8x384xf32, #tpu.memory_space<vmem>>, %arg1: memref<1x128xf32, #tpu.memory_space<vmem>>, %arg2: memref<8x24xf32, #tpu.memory_space<vmem>>, %arg3: memref<8x1xf32, #tpu.memory_space<vmem>>, %arg4: memref<8x1xf32, #tpu.memory_space<vmem>>, %arg5: memref<8x24xf32, #tpu.memory_space<vmem>>, %arg6: memref<8x1xf32, #tpu.memory_space<vmem>>, %arg7: memref<8x1xf32, #tpu.memory_space<vmem>>, %arg8: memref<8x128xf32, #tpu.memory_space<vmem>>, %arg9: memref<24x128xf32, #tpu.memory_space<vmem>>, %arg10: memref<8x384xf32, #tpu.memory_space<vmem>>, %arg11: memref<24x128xf32, #tpu.memory_space<vmem>>) attributes {dimension_semantics = [], scalar_prefetch = 0 : i64, scratch_operands = 3 : i64, tpu.core_type = #tpu.core_type<tc>} {
    %c0 = arith.constant 0 : index
    %c0_0 = arith.constant 0 : index
    %0 = vector.load %arg1[%c0, %c0_0] : memref<1x128xf32, #tpu.memory_space<vmem>>, vector<1x128xf32>
    %c0_1 = arith.constant 0 : index
    %c127 = arith.constant 127 : index
    %1 = vector.load %arg0[%c0_1, %c127] : memref<8x384xf32, #tpu.memory_space<vmem>>, vector<8x128xf32>
    %c0_2 = arith.constant 0 : index
    %c0_3 = arith.constant 0 : index
    %2 = vector.load %arg9[%c0_2, %c0_3] : memref<24x128xf32, #tpu.memory_space<vmem>>, vector<8x128xf32>
    tpu.vector_store %arg9[%c0_2, %c0_3], %1 {strides = array<i32>} : memref<24x128xf32, #tpu.memory_space<vmem>>, vector<8x128xf32>,
    %c0_4 = arith.constant 0 : index
    %c128 = arith.constant 128 : index
    %3 = vector.load %arg0[%c0_4, %c128] : memref<8x384xf32, #tpu.memory_space<vmem>>, vector<8x128xf32>
    %c8 = arith.constant 8 : index
    %c0_5 = arith.constant 0 : index
    %4 = vector.load %arg9[%c8, %c0_5] : memref<24x128xf32, #tpu.memory_space<vmem>>, vector<8x128xf32>
    tpu.vector_store %arg9[%c8, %c0_5], %3 {strides = array<i32>} : memref<24x128xf32, #tpu.memory_space<vmem>>, vector<8x128xf32>,
    %c0_6 = arith.constant 0 : index
    %c129 = arith.constant 129 : index
    %5 = vector.load %arg0[%c0_6, %c129] : memref<8x384xf32, #tpu.memory_space<vmem>>, vector<8x128xf32>
    %c16 = arith.constant 16 : index
    %c0_7 = arith.constant 0 : index
    %6 = vector.load %arg9[%c16, %c0_7] : memref<24x128xf32, #tpu.memory_space<vmem>>, vector<8x128xf32>
    tpu.vector_store %arg9[%c16, %c0_7], %5 {strides = array<i32>} : memref<24x128xf32, #tpu.memory_space<vmem>>, vector<8x128xf32>,
    %c0_8 = arith.constant 0 : index
    %c0_9 = arith.constant 0 : index
    %7 = vector.load %arg2[%c0_8, %c0_9] : memref<8x24xf32, #tpu.memory_space<vmem>>, vector<8x24xf32>
    %c0_10 = arith.constant 0 : index
    %c0_11 = arith.constant 0 : index
    %8 = vector.load %arg9[%c0_10, %c0_11] : memref<24x128xf32, #tpu.memory_space<vmem>>, vector<24x128xf32>
    %cst = arith.constant dense<0.000000e+00> : vector<8x128xf32>
    %9 = tpu.matmul %7, %8, %cst {dimension_numbers = #tpu.dot_dimension_numbers<[1], [0], [0], [1], [0, 0, 1, 1], [], []>} : vector<8x24xf32>, vector<24x128xf32>, vector<8x128xf32> -> vector<8x128xf32>
    %10 = vector.broadcast %0 : vector<1x128xf32> to vector<8x128xf32>
    %11 = arith.mulf %9, %10 : vector<8x128xf32>
    %cst_12 = arith.constant dense<0.000000e+00> : vector<8xf32>
    %12 = vector.multi_reduction <add>, %11, %cst_12 [1] : vector<8x128xf32> to vector<8xf32>
    %13 = vector.shape_cast %12 : vector<8xf32> to vector<8x1xf32>
    %14 = arith.mulf %11, %11 : vector<8x128xf32>
    %cst_13 = arith.constant dense<0.000000e+00> : vector<8xf32>
    %15 = vector.multi_reduction <add>, %14, %cst_13 [1] : vector<8x128xf32> to vector<8xf32>
    %16 = vector.shape_cast %15 : vector<8xf32> to vector<8x1xf32>
    %cst_14 = arith.constant 3.125000e-02 : f32
    %17 = vector.broadcast %cst_14 : f32 to vector<8x1xf32>
    %18 = arith.mulf %13, %17 : vector<8x1xf32>
    %cst_15 = arith.constant 3.125000e-02 : f32
    %19 = vector.broadcast %cst_15 : f32 to vector<8x1xf32>
    %20 = arith.mulf %16, %19 : vector<8x1xf32>
    %21 = arith.mulf %18, %18 : vector<8x1xf32>
    %22 = arith.subf %20, %21 : vector<8x1xf32>
    %c0_16 = arith.constant 0 : index
    %c0_17 = arith.constant 0 : index
    %23 = vector.load %arg3[%c0_16, %c0_17] : memref<8x1xf32, #tpu.memory_space<vmem>>, vector<8x1xf32>
    %cst_18 = arith.constant 9.99999974E-6 : f32
    %24 = vector.broadcast %cst_18 : f32 to vector<8x1xf32>
    %25 = arith.addf %22, %24 : vector<8x1xf32>
    %26 = math.rsqrt %25 : vector<8x1xf32>
    %27 = arith.mulf %23, %26 : vector<8x1xf32>
    %c0_19 = arith.constant 0 : index
    %c0_20 = arith.constant 0 : index
    %28 = vector.load %arg4[%c0_19, %c0_20] : memref<8x1xf32, #tpu.memory_space<vmem>>, vector<8x1xf32>
    %29 = arith.mulf %18, %27 : vector<8x1xf32>
    %30 = arith.subf %28, %29 : vector<8x1xf32>
    %31 = vector.broadcast %27 : vector<8x1xf32> to vector<8x128xf32>
    %32 = arith.mulf %9, %31 : vector<8x128xf32>
    %33 = vector.broadcast %30 : vector<8x1xf32> to vector<8x128xf32>
    %34 = arith.addf %32, %33 : vector<8x128xf32>
    %cst_21 = arith.constant 0.000000e+00 : f32
    %35 = vector.broadcast %cst_21 : f32 to vector<8x128xf32>
    %36 = arith.maximumf %34, %35 : vector<8x128xf32>
    %37 = vector.broadcast %0 : vector<1x128xf32> to vector<8x128xf32>
    %38 = arith.mulf %36, %37 : vector<8x128xf32>
    %cst_22 = arith.constant 0.000000e+00 : f32
    %39 = vector.broadcast %cst_22 : f32 to vector<8x128xf32>
    %c0_23 = arith.constant 0 : index
    %c0_24 = arith.constant 0 : index
    %40 = vector.load %arg10[%c0_23, %c0_24] : memref<8x384xf32, #tpu.memory_space<vmem>>, vector<8x128xf32>
    tpu.vector_store %arg10[%c0_23, %c0_24], %39 {strides = array<i32>} : memref<8x384xf32, #tpu.memory_space<vmem>>, vector<8x128xf32>,
    %c0_25 = arith.constant 0 : index
    %c128_26 = arith.constant 128 : index
    %41 = vector.load %arg10[%c0_25, %c128_26] : memref<8x384xf32, #tpu.memory_space<vmem>>, vector<8x128xf32>
    tpu.vector_store %arg10[%c0_25, %c128_26], %38 {strides = array<i32>} : memref<8x384xf32, #tpu.memory_space<vmem>>, vector<8x128xf32>,
    %cst_27 = arith.constant 0.000000e+00 : f32
    %42 = vector.broadcast %cst_27 : f32 to vector<8x128xf32>
    %c0_28 = arith.constant 0 : index
    %c256 = arith.constant 256 : index
    %43 = vector.load %arg10[%c0_28, %c256] : memref<8x384xf32, #tpu.memory_space<vmem>>, vector<8x128xf32>
    tpu.vector_store %arg10[%c0_28, %c256], %42 {strides = array<i32>} : memref<8x384xf32, #tpu.memory_space<vmem>>, vector<8x128xf32>,
    %c0_29 = arith.constant 0 : index
    %c127_30 = arith.constant 127 : index
    %44 = vector.load %arg10[%c0_29, %c127_30] : memref<8x384xf32, #tpu.memory_space<vmem>>, vector<8x128xf32>
    %c0_31 = arith.constant 0 : index
    %c0_32 = arith.constant 0 : index
    %45 = vector.load %arg11[%c0_31, %c0_32] : memref<24x128xf32, #tpu.memory_space<vmem>>, vector<8x128xf32>
    tpu.vector_store %arg11[%c0_31, %c0_32], %44 {strides = array<i32>} : memref<24x128xf32, #tpu.memory_space<vmem>>, vector<8x128xf32>,
    %c8_33 = arith.constant 8 : index
    %c0_34 = arith.constant 0 : index
    %46 = vector.load %arg11[%c8_33, %c0_34] : memref<24x128xf32, #tpu.memory_space<vmem>>, vector<8x128xf32>
    tpu.vector_store %arg11[%c8_33, %c0_34], %38 {strides = array<i32>} : memref<24x128xf32, #tpu.memory_space<vmem>>, vector<8x128xf32>,
    %c0_35 = arith.constant 0 : index
    %c129_36 = arith.constant 129 : index
    %47 = vector.load %arg10[%c0_35, %c129_36] : memref<8x384xf32, #tpu.memory_space<vmem>>, vector<8x128xf32>
    %c16_37 = arith.constant 16 : index
    %c0_38 = arith.constant 0 : index
    %48 = vector.load %arg11[%c16_37, %c0_38] : memref<24x128xf32, #tpu.memory_space<vmem>>, vector<8x128xf32>
    tpu.vector_store %arg11[%c16_37, %c0_38], %47 {strides = array<i32>} : memref<24x128xf32, #tpu.memory_space<vmem>>, vector<8x128xf32>,
    %c0_39 = arith.constant 0 : index
    %c0_40 = arith.constant 0 : index
    %49 = vector.load %arg5[%c0_39, %c0_40] : memref<8x24xf32, #tpu.memory_space<vmem>>, vector<8x24xf32>
    %c0_41 = arith.constant 0 : index
    %c0_42 = arith.constant 0 : index
    %50 = vector.load %arg11[%c0_41, %c0_42] : memref<24x128xf32, #tpu.memory_space<vmem>>, vector<24x128xf32>
    %cst_43 = arith.constant dense<0.000000e+00> : vector<8x128xf32>
    %51 = tpu.matmul %49, %50, %cst_43 {dimension_numbers = #tpu.dot_dimension_numbers<[1], [0], [0], [1], [0, 0, 1, 1], [], []>} : vector<8x24xf32>, vector<24x128xf32>, vector<8x128xf32> -> vector<8x128xf32>
    %52 = vector.broadcast %0 : vector<1x128xf32> to vector<8x128xf32>
    %53 = arith.mulf %51, %52 : vector<8x128xf32>
    %cst_44 = arith.constant dense<0.000000e+00> : vector<8xf32>
    %54 = vector.multi_reduction <add>, %53, %cst_44 [1] : vector<8x128xf32> to vector<8xf32>
    %55 = vector.shape_cast %54 : vector<8xf32> to vector<8x1xf32>
    %56 = arith.mulf %53, %53 : vector<8x128xf32>
    %cst_45 = arith.constant dense<0.000000e+00> : vector<8xf32>
    %57 = vector.multi_reduction <add>, %56, %cst_45 [1] : vector<8x128xf32> to vector<8xf32>
    %58 = vector.shape_cast %57 : vector<8xf32> to vector<8x1xf32>
    %cst_46 = arith.constant 3.125000e-02 : f32
    %59 = vector.broadcast %cst_46 : f32 to vector<8x1xf32>
    %60 = arith.mulf %55, %59 : vector<8x1xf32>
    %cst_47 = arith.constant 3.125000e-02 : f32
    %61 = vector.broadcast %cst_47 : f32 to vector<8x1xf32>
    %62 = arith.mulf %58, %61 : vector<8x1xf32>
    %63 = arith.mulf %60, %60 : vector<8x1xf32>
    %64 = arith.subf %62, %63 : vector<8x1xf32>
    %c0_48 = arith.constant 0 : index
    %c0_49 = arith.constant 0 : index
    %65 = vector.load %arg6[%c0_48, %c0_49] : memref<8x1xf32, #tpu.memory_space<vmem>>, vector<8x1xf32>
    %cst_50 = arith.constant 9.99999974E-6 : f32
    %66 = vector.broadcast %cst_50 : f32 to vector<8x1xf32>
    %67 = arith.addf %64, %66 : vector<8x1xf32>
    %68 = math.rsqrt %67 : vector<8x1xf32>
    %69 = arith.mulf %65, %68 : vector<8x1xf32>
    %c0_51 = arith.constant 0 : index
    %c0_52 = arith.constant 0 : index
    %70 = vector.load %arg7[%c0_51, %c0_52] : memref<8x1xf32, #tpu.memory_space<vmem>>, vector<8x1xf32>
    %71 = arith.mulf %60, %69 : vector<8x1xf32>
    %72 = arith.subf %70, %71 : vector<8x1xf32>
    %73 = vector.broadcast %69 : vector<8x1xf32> to vector<8x128xf32>
    %74 = arith.mulf %51, %73 : vector<8x128xf32>
    %75 = vector.broadcast %72 : vector<8x1xf32> to vector<8x128xf32>
    %76 = arith.addf %74, %75 : vector<8x128xf32>
    %cst_53 = arith.constant 0.000000e+00 : f32
    %77 = vector.broadcast %cst_53 : f32 to vector<8x128xf32>
    %78 = arith.maximumf %76, %77 : vector<8x128xf32>
    %c0_54 = arith.constant 0 : index
    %c0_55 = arith.constant 0 : index
    %79 = vector.load %arg8[%c0_54, %c0_55] : memref<8x128xf32, #tpu.memory_space<vmem>>, vector<8x128xf32>
    tpu.vector_store %arg8[%c0_54, %c0_55], %78 {strides = array<i32>} : memref<8x128xf32, #tpu.memory_space<vmem>>, vector<8x128xf32>,
    return
  }
}

</mosaic_0001>

<bundles_post_ra>
// kernel: tpu_custom_call.1
= control target key start
LH: loop header
LB: loop body
LE: loop exit
PB: predicated region body
PF: predicated region fallthrough
CT: control target
= control target key end

     0   :  { %13 = vsyncpa [#allocation6], 0  ;;  %s434_s0 = inlined_call_operand.vmem [shape: f32[8,384], index: 0, kind: input, shape index: {}]   ;;  %s435_s1 = inlined_call_operand.hbm [shape: f32[1,128], index: 1, kind: input, shape index: {}]   ;;  %s436_s2 = inlined_call_operand.vmem [shape: f32[8,24], index: 2, kind: input, shape index: {}]   ;;  %s437_s3 = inlined_call_operand.vmem [shape: f32[8,1], index: 3, kind: input, shape index: {}]   ;;  %s438_s4 = inlined_call_operand.vmem [shape: f32[8,1], index: 4, kind: input, shape index: {}]   ;;  %s439_s5 = inlined_call_operand.vmem [shape: f32[8,24], index: 5, kind: input, shape index: {}]   ;;  %s440_s6 = inlined_call_operand.vmem [shape: f32[8,1], index: 6, kind: input, shape index: {}]   ;;  %s441_s7 = inlined_call_operand.vmem [shape: f32[8,1], index: 7, kind: input, shape index: {}]   ;;  %s442_s8 = inlined_call_operand.hbm [shape: f32[8,128], index: 8, kind: output, shape index: {}]  }
   0x1   :  { %14 = vsyncpa [#allocation7], 0  ;;  %s22_s29 = sshll.u32 %s435_s1, 4  ;;  %s340_s30 = smov [#allocation5]   ;;  %s23_s29 = int_to_ptr.hbm [resolvable:$true] %s22_s29 }
   0x2   :  { %s24_s9 = sshll.u32 %s340_s30, 4  ;;  %s25_s9 = int_to_ptr.vmem [resolvable:$true] %s24_s9 }
   0x3   :  { %27 = dma.hbm_to_vmem [thread:$0]  %s23_s29, 16, %s25_s9, [#allocation6]  }
   0x4   :  { %336 = dma.done.wait [#allocation6], 16  }
   0x5   :  { %337 = vsyncadd [#allocation6], 4294967280  ;;  %v59_v0 = vld [vmem:[%s434_s0 + $0x8] sm:$0xff]  ;;  %v60_v1 = vld [vmem:[%s434_s0 + $0x10] sm:$0xff]  ;;  %s341_s14 = smov 127   ;;  %s342_s16 = smov 1  }
   0x6   :  { %v260_v2 = vpack.i.bf16 %v60_v1, %v59_v0  ;;  %v45_v3 = vld [vmem:[%s434_s0] sm:$0xff]  ;;  %vm67_vm0 = vcmask 1039360   ;;  %vm53_vm1 = vcmask 7168   ;;  %vm75_vm2 = vcmask 195584   ;;  %s345_s24 = smov [#allocation8]  }
   0x7   :  { %v265_v4 = vpack.i.bf16 %v59_v0, %v45_v3  ;;  %v71_v12 = vld [vmem:[%s436_s2] sm:$0xff]  ;;  %v343_v18 = vmov 0   ;;  %v344_v44 = vmov 0.0   ;;  %s240_s25 = sshll.u32 %s345_s24, 4  ;;  %s241_s25 = int_to_ptr.vmem [resolvable:$true] %s240_s25 }
   0x8   :  { %261 = vrot.lane.b32.xlu0 %v260_v2, %s341_s14  ;;  %v283_v14 = vld [vmem:[#allocation5] ss:$0 sm:$0xff]  ;;  %270 = vset.pattern.permute.xlu2 %v343_v18 }
   0x9   :  { %281 = vset.pattern.permute.xlu1 %v343_v18  ;;  %282 = vset.pattern.permute.xlu0 %v343_v18  ;;  %v112_v31 = vld [vmem:[%s437_s3] sm:$0xff] }
   0xa   :  { %v125_v36 = vld [vmem:[%s438_s4] sm:$0xff] }
   0xb   :  { %v168_v54 = vld [vmem:[%s439_s5] sm:$0xff] }
  0x10   :  { %266 = vrot.lane.b32.xlu0 %v265_v4, %s342_s16 }
  0x7a   :  { %v262_v5 = vpop.permute.xlu0 %261 }
  0x7b   :  { %v264_v6 = vunpack.i.h.bf16 %v262_v5  ;;  %v263_v7 = vunpack.i.l.bf16 %v262_v5 }
  0x7d   :  { %v68_v8 = vsel %vm67_vm0, %v263_v7, %v264_v6  ;;  %v205_v7 = vld [vmem:[%s440_s6] sm:$0xff]  ;;  %s242_s6 = sshll.u32 %s442_s8, 4  ;;  %s243_s6 = int_to_ptr.hbm [resolvable:$true] %s242_s6 }
  0x7e   :  { %92 = vmatpush.msra.mxu0 %v68_v8 }
  0x80   :  { %93 = vmatpush.msra.mxu0 %v59_v0 }
  0x82   :  { %v267_v9 = vpop.permute.xlu0 %266 }
  0x83   :  { %v269_v10 = vunpack.i.h.bf16 %v267_v9  ;;  %v268_v11 = vunpack.i.l.bf16 %v267_v9 }
  0x85   :  { %v54_v13 = vsel %vm53_vm1, %v268_v11, %v269_v10 }
  0x86   :  { %94 = vmatpush.msra.mxu0 %v54_v13 }
  0x87   :  { %252 = vmatmul.msk.f32.vlgmr.msra.gmra.mxu0 %vm75_vm2, %v71_v12  ;;  %v218_v12 = vld [vmem:[%s441_s7] sm:$0xff] }
 0x104   :  { %v96_v15 = vpop.f32.mrf.mxu0 }
 0x105   :  { %v102_v16 = vmul.f32 %v283_v14, %v96_v15 }
 0x107   :  { %103 = vadd.xlane.f32.xlu1 %v102_v16  ;;  %v105_v17 = vmul.f32 %v102_v16, %v102_v16 }
 0x10f   :  { %106 = vadd.xlane.f32.xlu1 %v105_v17 }
 0x17a   :  { %v104_v19 = vpop.xlane.xlu1 %103 }
 0x17b   :  { %v108_v20 = vmul.f32 0.03125, %v104_v19 }
 0x17d   :  { %v110_v22 = vmul.f32 %v108_v20, %v108_v20 }
 0x182   :  { %v107_v21 = vpop.xlane.xlu1 %106 }
 0x183   :  { %v109_v23 = vmul.f32 0.03125, %v107_v21 }
 0x185   :  { %v111_v24 = vsub.f32 %v109_v23, %v110_v22 }
 0x187   :  { %v113_v25 = vadd.f32 1e-05, %v111_v24 }
 0x189   :  { %284 = vrsqrt.f32 %v113_v25  ;;  %vm120_vm4 = vweird.f32 %v113_v25 }
 0x18f   :  { %v285_v26 = vpop.eup %284 }
 0x190   :  { %v115_v27 = vmul.f32 %v285_v26, %v113_v25  ;;  %vm121_vm3 = vweird.f32 %v285_v26 }
 0x191   :  { %vm122_vm5 = vmor %vm120_vm4, %vm121_vm3 }
 0x192   :  { %v116_v28 = vmul.f32 %v285_v26, %v115_v27 }
 0x194   :  { %v117_v29 = vmul.f32 0.5, %v116_v28 }
 0x196   :  { %v118_v30 = vsub.f32 1.5, %v117_v29 }
 0x198   :  { %v119_v32 = vmul.f32 %v285_v26, %v118_v30 }
 0x19a   :  { %v123_v33 = vsel %vm122_vm5, %v285_v26, %v119_v32 }
 0x19b   :  { %v124_v34 = vmul.f32 %v123_v33, %v112_v31 }
 0x19d   :  { %130 = vperm.xlu2 %270, %v124_v34   ;;  %v126_v35 = vmul.f32 %v124_v34, %v108_v20 }
 0x19f   :  { %v127_v37 = vsub.f32 %v125_v36, %v126_v35 }
 0x1a5   :  { %136 = vperm.xlu2 %270, %v127_v37  }
 0x1f7   :  { %v131_v38 = vpop.permute.xlu2 %130 }
 0x1f8   :  { %v133_v39 = vmul.f32 %v131_v38, %v96_v15 }
 0x1ff   :  { %v137_v40 = vpop.permute.xlu2 %136 }
 0x200   :  { %v139_v41 = vadd.f32 %v137_v40, %v133_v39 }
 0x202   :  { %v140_v42 = vmax.f32 %v139_v41, 0.0 }
 0x204   :  { %v141_v43 = vmul.f32 %v283_v14, %v140_v42 }
 0x206   :  { %v276_v45 = vpack.i.bf16 %v141_v43, %v344_v44  ;;  %v271_v46 = vpack.i.bf16 0.0, %v141_v43 }
 0x208   :  { %277 = vrot.lane.b32.xlu1 %v276_v45, %s342_s16  ;;  %272 = vrot.lane.b32.xlu0 %v271_v46, %s341_s14 }
 0x27a   :  { %v278_v47 = vpop.permute.xlu1 %277  ;;  %v273_v48 = vpop.permute.xlu0 %272 }
 0x27b   :  { %v275_v49 = vunpack.i.h.bf16 %v273_v48  ;;  %v274_v50 = vunpack.i.l.bf16 %v273_v48  ;;  %v280_v51 = vunpack.i.h.bf16 %v278_v47  ;;  %v279_v52 = vunpack.i.l.bf16 %v278_v47 }
 0x27d   :  { %v165_v53 = vsel %vm67_vm0, %v274_v50, %v275_v49  ;;  %v153_v55 = vsel %vm53_vm1, %v279_v52, %v280_v51 }
 0x27e   :  { %188 = vmatpush.msra.mxu1 %v165_v53 }
 0x280   :  { %189 = vmatpush.msra.mxu1 %v141_v43 }
 0x282   :  { %190 = vmatpush.msra.mxu1 %v153_v55 }
 0x283   :  { %253 = vmatmul.msk.f32.vlgmr.msra.gmra.mxu1 %vm75_vm2, %v168_v54 }
 0x300   :  { %v192_v56 = vpop.f32.mrf.mxu1 }
 0x301   :  { %v195_v57 = vmul.f32 %v283_v14, %v192_v56 }
 0x303   :  { %196 = vadd.xlane.f32.xlu2 %v195_v57  ;;  %v198_v58 = vmul.f32 %v195_v57, %v195_v57 }
 0x305   :  { %199 = vadd.xlane.f32.xlu0 %v198_v58 }
 0x376   :  { %v197_v59 = vpop.xlane.xlu2 %196 }
 0x377   :  { %v201_v60 = vmul.f32 0.03125, %v197_v59 }
 0x378   :  { %v200_v61 = vpop.xlane.xlu0 %199 }
 0x379   :  { %v203_v62 = vmul.f32 %v201_v60, %v201_v60  ;;  %v202_v63 = vmul.f32 0.03125, %v200_v61 }
 0x37b   :  { %v204_v0 = vsub.f32 %v202_v63, %v203_v62 }
 0x37d   :  { %v206_v1 = vadd.f32 1e-05, %v204_v0 }
 0x37f   :  { %286 = vrsqrt.f32 %v206_v1  ;;  %vm213_vm7 = vweird.f32 %v206_v1 }
 0x385   :  { %v287_v2 = vpop.eup %286 }
 0x386   :  { %v208_v3 = vmul.f32 %v287_v2, %v206_v1  ;;  %vm214_vm6 = vweird.f32 %v287_v2 }
 0x387   :  { %vm215_vm8 = vmor %vm213_vm7, %vm214_vm6 }
 0x388   :  { %v209_v4 = vmul.f32 %v287_v2, %v208_v3 }
 0x38a   :  { %v210_v5 = vmul.f32 0.5, %v209_v4 }
 0x38c   :  { %v211_v6 = vsub.f32 1.5, %v210_v5 }
 0x38e   :  { %v212_v8 = vmul.f32 %v287_v2, %v211_v6 }
 0x390   :  { %v216_v9 = vsel %vm215_vm8, %v287_v2, %v212_v8 }
 0x391   :  { %v217_v10 = vmul.f32 %v216_v9, %v205_v7 }
 0x393   :  { %223 = vperm.xlu1 %281, %v217_v10   ;;  %v219_v11 = vmul.f32 %v217_v10, %v201_v60 }
 0x395   :  { %v220_v13 = vsub.f32 %v218_v12, %v219_v11 }
 0x39b   :  { %229 = vperm.xlu1 %281, %v220_v13  }
 0x405   :  { %v224_v14 = vpop.permute.xlu1 %223 }
 0x406   :  { %v226_v15 = vmul.f32 %v224_v14, %v192_v56 }
 0x40d   :  { %v230_v16 = vpop.permute.xlu1 %229 }
 0x40e   :  { %v232_v17 = vadd.f32 %v230_v16, %v226_v15 }
 0x410   :  { %v233_v18 = vmax.f32 %v232_v17, 0.0 }
 0x412   :  { %234 = vst [vmem:[#allocation8] sm:$0xff] %v233_v18 }
 0x413   :  { %245 = dma.vmem_to_hbm [thread:$0]  %s241_s25, 128, %s243_s6, [#allocation7]  }
 0x414   :  { %338 = dma.done.wait [#allocation7], 128  }
 0x415   :  { %339 = vsyncadd [#allocation7], 4294967168 }
 0x416   :  { %250 = vsyncpa [#allocation6], 1 }
 0x417   :  { %251 = vsyncpa [#allocation7], 1 }

</bundles_post_ra>
